<compile_context>
chip_gen: v6e
topology: v6e:2x2x1
jax: 0.10.0
libtpu: 0.0.40
codegen_flags: <defaults>
</compile_context>

<pallas_src>
import functools

import jax
import jax.numpy as jnp
from jax.experimental import pallas as pl
from jax.experimental.pallas import tpu as pltpu

_LANE = 128


def _round_up(n, m):
    return ((n + m - 1) // m) * m


# --------------------------------------------------------------------------- #
# Kernel
# --------------------------------------------------------------------------- #
def _mlp_kernel(x_ref, w1_ref, b1_ref, w2_ref, b2_ref, o_ref):
    # x_ref:  (TM, D_in)
    # w1_ref: (D_in, H_pad)        -- pre-transposed in the wrapper
    # b1_ref: (1, H_pad)
    # w2_ref: (H_pad, OUT_COLS)    -- pre-transposed in the wrapper
    # b2_ref: (1, OUT_COLS)
    # o_ref:  (TM, OUT_COLS)
    x = x_ref[...]

    # fc1: canonical contraction (LHS dim 1 with RHS dim 0) -> no RHS relayout.
    h = jnp.dot(x, w1_ref[...], preferred_element_type=jnp.float32)
    h = h + b1_ref[...].astype(jnp.float32)

    # fc2: keep the f32 accumulator for the second matmul (matches f32 reference).
    y = jnp.dot(h, w2_ref[...], preferred_element_type=jnp.float32)
    y = y + b2_ref[...].astype(jnp.float32)

    o_ref[...] = y.astype(o_ref.dtype)


# --------------------------------------------------------------------------- #
# One-time parameter preparation (hoisted out of the per-forward path)
# --------------------------------------------------------------------------- #
def prepare_mlp_params(w1, b1, w2, b2, feature_multiple=_LANE):
    """Pad + transpose PyTorch-layout (out, in) Linear params once.

    feature_multiple: 128 by default; use 256 for large, MXU-bound hidden dims
    on v6e/v7x (their MXUs are 2x256x256).
    """
    h_dim, d_in = w1.shape
    d_out = w2.shape[0]

    h_pad = _round_up(h_dim, feature_multiple)
    # Pad the output feature dim only when it is >= 128 and not lane-aligned;
    # small outputs use a full-extent (masked-store) last dim instead of 16x
    # HBM write amplification.
    if d_out >= _LANE and d_out % _LANE != 0:
        out_cols = _round_up(d_out, _LANE)
    else:
        out_cols = d_out

    w1_t = jnp.zeros((d_in, h_pad), w1.dtype).at[:, :h_dim].set(w1.T)
    b1_p = jnp.zeros((1, h_pad), b1.dtype).at[0, :h_dim].set(b1)
    w2_t = jnp.zeros((h_pad, out_cols), w2.dtype).at[:h_dim, :d_out].set(w2.T)
    b2_p = jnp.zeros((1, out_cols), b2.dtype).at[0, :d_out].set(b2)

    params = (w1_t, b1_p, w2_t, b2_p)
    return params, int(d_out)


# --------------------------------------------------------------------------- #
# Pallas call wrapper
# --------------------------------------------------------------------------- #
def _choose_tm(d_in, out_cols, h_pad, itemsize, tm):
    if tm is None:
        # Row-tile VMEM budget: double-buffered x/out tiles + f32 intermediates.
        # 12 MiB keeps us safely under v5e's 16 MiB scoped-VMEM default.
        per_row = 2 * (d_in + out_cols) * itemsize + (h_pad + out_cols) * 4
        budget = 12 * (1 << 20)
        tm = min(1024, max(64, budget // max(per_row, 1)))
    # (8,128) constraint: row tiles must be a multiple of 8 sublanes.
    tm = max(8, (int(tm) // 8) * 8)
    return tm


def _mlp_pallas(x2d, params, d_out, tm=None):
    """y = fc2(fc1(x2d)) with pre-transposed / padded params."""
    w1_t, b1_p, w2_t, b2_p = params
    n_rows, d_in = x2d.shape
    h_pad = w1_t.shape[1]
    out_cols = w2_t.shape[1]
    itemsize = jnp.dtype(x2d.dtype).itemsize

    tm = _choose_tm(d_in, out_cols, h_pad, itemsize, tm)

    if n_rows <= tm and n_rows <= 256:
        # Single full-extent block (always legal, no sublane-rounding needed).
        tm_eff = n_rows
        grid = (1,)
    else:
        # Guarantee >= 2 row tiles so the "parallel" axis can use both v7x TCs.
        tm_eff = min(tm, _round_up(pl.cdiv(n_rows, 2), 8))
        grid = (pl.cdiv(n_rows, tm_eff),)

    # Explicit VMEM limit from the actual footprint (double-buffered I/O tiles,
    # double-buffered resident weights, f32 intermediates), capped at v7x's
    # 64 MiB physical per-TC VMEM.
    w_bytes = sum(int(a.size) * jnp.dtype(a.dtype).itemsize for a in params)
    io_bytes = 2 * tm_eff * (d_in + out_cols) * itemsize
    interm_bytes = tm_eff * (h_pad + out_cols) * 4
    vmem_need = 2 * w_bytes + io_bytes + interm_bytes
    vmem_limit = int(min(64 * (1 << 20), max(2 * vmem_need, 8 * (1 << 20))))

    y = pl.pallas_call(
        _mlp_kernel,
        out_shape=jax.ShapeDtypeStruct((n_rows, out_cols), x2d.dtype),
        grid_spec=pltpu.PrefetchScalarGridSpec(
            num_scalar_prefetch=0,
            grid=grid,
            in_specs=[
                pl.BlockSpec((tm_eff, d_in), lambda i: (i, 0)),       # x: row-tiled
                pl.BlockSpec((d_in, h_pad), lambda i: (0, 0)),        # w1^T: resident
                pl.BlockSpec((1, h_pad), lambda i: (0, 0)),           # b1: resident
                pl.BlockSpec((h_pad, out_cols), lambda i: (0, 0)),    # w2^T: resident
                pl.BlockSpec((1, out_cols), lambda i: (0, 0)),        # b2: resident
            ],
            out_specs=pl.BlockSpec((tm_eff, out_cols), lambda i: (i, 0)),
        ),
        compiler_params=pltpu.CompilerParams(
            dimension_semantics=("parallel",),   # independent row tiles
            vmem_limit_bytes=vmem_limit,
        ),
    )(x2d, w1_t, b1_p, w2_t, b2_p)

    if out_cols != d_out:
        y = y[:, :d_out]
    return y


@functools.partial(jax.jit, static_argnames=("d_out", "tm"))
def mlp_forward(x, params, d_out, tm=None):
    """MLPModel.forward: fc2(fc1(x)). Accepts x of shape (..., inputDim)."""
    d_in = x.shape[-1]
    lead = x.shape[:-1]
    x2d = x.reshape(-1, d_in)
    y2d = _mlp_pallas(x2d, params, d_out, tm=tm)
    return y2d.reshape(*lead, d_out)


# --------------------------------------------------------------------------- #
# Self-test
# --------------------------------------------------------------------------- #
if __name__ == "__main__":
    INPUT_DIM, HIDDEN_NUM, OUTPUT_DIM = 16, 32, 8

    key = jax.random.PRNGKey(0)
    k1, k2, k3, k4, k5, k6, k7 = jax.random.split(key, 7)

    # Deterministic "nn.Linear" params (PyTorch (out, in) weight convention).
    w1 = jax.random.normal(k1, (HIDDEN_NUM, INPUT_DIM), jnp.float32) * 0.1
    b1 = jax.random.normal(k2, (HIDDEN_NUM,), jnp.float32) * 0.1
    w2 = jax.random.normal(k3, (OUTPUT_DIM, HIDDEN_NUM), jnp.float32) * 0.1
    b2 = jax.random.normal(k4, (OUTPUT_DIM,), jnp.float32) * 0.1

    # One-time weight prep (padding + transpose hoisted out of the forward path).
    params, d_out = prepare_mlp_params(w1, b1, w2, b2)
    params = jax.tree_util.tree_map(jax.block_until_ready, params)

    def ref(x):
        h = x.reshape(-1, INPUT_DIM) @ w1.T + b1
        return (h @ w2.T + b2).reshape(*x.shape[:-1], OUTPUT_DIM)

    # 1) Small batch -> single full-extent block path.
    x_small = jax.random.normal(k5, (2, INPUT_DIM), dtype=jnp.float32)
    y_small = jax.block_until_ready(mlp_forward(x_small, params, d_out))
    assert y_small.shape == (2, OUTPUT_DIM), y_small.shape
    assert jnp.allclose(y_small, ref(x_small), atol=1e-5, rtol=1e-5)

    # 2) Larger batch -> adaptive TM, >=2 row tiles (megacore-shardable grid).
    x_big = jax.random.normal(k6, (512, INPUT_DIM), dtype=jnp.float32)
    y_big = jax.block_until_ready(mlp_forward(x_big, params, d_out))
    assert y_big.shape == (512, OUTPUT_DIM), y_big.shape
    assert jnp.allclose(y_big, ref(x_big), atol=1e-5, rtol=1e-5)

    # 3) Leading batch dims are flattened and restored.
    x_nd = jax.random.normal(k7, (2, 8, INPUT_DIM), dtype=jnp.float32)
    y_nd = jax.block_until_ready(mlp_forward(x_nd, params, d_out))
    assert y_nd.shape == (2, 8, OUTPUT_DIM), y_nd.shape
    assert jnp.allclose(y_nd, ref(x_nd), atol=1e-5, rtol=1e-5)

    print("KERNEL_OK")
</pallas_src>

<mosaic_0001>
module attributes {stable_mosaic.version = 11 : i64} {
  func.func @_mlp_kernel(%arg0: i32, %arg1: memref<2x16xf32, #tpu.memory_space<vmem>>, %arg2: memref<16x128xf32, #tpu.memory_space<vmem>>, %arg3: memref<1x128xf32, #tpu.memory_space<vmem>>, %arg4: memref<128x8xf32, #tpu.memory_space<vmem>>, %arg5: memref<1x8xf32, #tpu.memory_space<vmem>>, %arg6: memref<2x8xf32, #tpu.memory_space<vmem>>) attributes {dimension_semantics = [#tpu.dimension_semantics<parallel>], iteration_bounds = array<i64: 1>, scalar_prefetch = 0 : i64, scratch_operands = 0 : i64, tpu.core_type = #tpu.core_type<tc>, window_params = [{transform_indices = @transform_0, window_bounds = array<i64: 2, 16>}, {pipeline_mode = #tpu.pipeline_mode<synchronous>, transform_indices = @transform_1, window_bounds = array<i64: 16, 128>}, {pipeline_mode = #tpu.pipeline_mode<synchronous>, transform_indices = @transform_2, window_bounds = array<i64: 1, 128>}, {pipeline_mode = #tpu.pipeline_mode<synchronous>, transform_indices = @transform_3, window_bounds = array<i64: 128, 8>}, {pipeline_mode = #tpu.pipeline_mode<synchronous>, transform_indices = @transform_4, window_bounds = array<i64: 1, 8>}, {transform_indices = @transform_5, window_bounds = array<i64: 2, 8>}]} {
    %c0 = arith.constant 0 : index
    %c0_0 = arith.constant 0 : index
    %0 = vector.load %arg1[%c0, %c0_0] : memref<2x16xf32, #tpu.memory_space<vmem>>, vector<2x16xf32>
    %c0_1 = arith.constant 0 : index
    %c0_2 = arith.constant 0 : index
    %1 = vector.load %arg2[%c0_1, %c0_2] : memref<16x128xf32, #tpu.memory_space<vmem>>, vector<16x128xf32>
    %cst = arith.constant dense<0.000000e+00> : vector<2x128xf32>
    %2 = tpu.matmul %0, %1, %cst {dimension_numbers = #tpu.dot_dimension_numbers<[1], [0], [0], [1], [0, 0, 1, 1], [], []>} : vector<2x16xf32>, vector<16x128xf32>, vector<2x128xf32> -> vector<2x128xf32>
    %c0_3 = arith.constant 0 : index
    %c0_4 = arith.constant 0 : index
    %3 = vector.load %arg3[%c0_3, %c0_4] : memref<1x128xf32, #tpu.memory_space<vmem>>, vector<1x128xf32>
    %4 = vector.broadcast %3 : vector<1x128xf32> to vector<2x128xf32>
    %5 = arith.addf %2, %4 : vector<2x128xf32>
    %c0_5 = arith.constant 0 : index
    %c0_6 = arith.constant 0 : index
    %6 = vector.load %arg4[%c0_5, %c0_6] : memref<128x8xf32, #tpu.memory_space<vmem>>, vector<128x8xf32>
    %cst_7 = arith.constant dense<0.000000e+00> : vector<2x8xf32>
    %7 = tpu.matmul %5, %6, %cst_7 {dimension_numbers = #tpu.dot_dimension_numbers<[1], [0], [0], [1], [0, 0, 1, 1], [], []>} : vector<2x128xf32>, vector<128x8xf32>, vector<2x8xf32> -> vector<2x8xf32>
    %c0_8 = arith.constant 0 : index
    %c0_9 = arith.constant 0 : index
    %8 = vector.load %arg5[%c0_8, %c0_9] : memref<1x8xf32, #tpu.memory_space<vmem>>, vector<1x8xf32>
    %9 = vector.broadcast %8 : vector<1x8xf32> to vector<2x8xf32>
    %10 = arith.addf %7, %9 : vector<2x8xf32>
    %c0_10 = arith.constant 0 : index
    %c0_11 = arith.constant 0 : index
    %11 = vector.load %arg6[%c0_10, %c0_11] : memref<2x8xf32, #tpu.memory_space<vmem>>, vector<2x8xf32>
    tpu.vector_store %arg6[%c0_10, %c0_11], %10 {strides = array<i32>} : memref<2x8xf32, #tpu.memory_space<vmem>>, vector<2x8xf32>,
    return
  }
  func.func @transform_0(%arg0: i32) -> (i32, i32) {
    %c0_i32 = arith.constant 0 : i32
    %c0_i32_0 = arith.constant 0 : i32
    return %arg0, %c0_i32 : i32, i32
  }
  func.func @transform_1(%arg0: i32) -> (i32, i32) {
    %c0_i32 = arith.constant 0 : i32
    %c0_i32_0 = arith.constant 0 : i32
    %c0_i32_1 = arith.constant 0 : i32
    return %c0_i32, %c0_i32_0 : i32, i32
  }
  func.func @transform_2(%arg0: i32) -> (i32, i32) {
    %c0_i32 = arith.constant 0 : i32
    %c0_i32_0 = arith.constant 0 : i32
    %c0_i32_1 = arith.constant 0 : i32
    return %c0_i32, %c0_i32_0 : i32, i32
  }
  func.func @transform_3(%arg0: i32) -> (i32, i32) {
    %c0_i32 = arith.constant 0 : i32
    %c0_i32_0 = arith.constant 0 : i32
    %c0_i32_1 = arith.constant 0 : i32
    return %c0_i32, %c0_i32_0 : i32, i32
  }
  func.func @transform_4(%arg0: i32) -> (i32, i32) {
    %c0_i32 = arith.constant 0 : i32
    %c0_i32_0 = arith.constant 0 : i32
    %c0_i32_1 = arith.constant 0 : i32
    return %c0_i32, %c0_i32_0 : i32, i32
  }
  func.func @transform_5(%arg0: i32) -> (i32, i32) {
    %c0_i32 = arith.constant 0 : i32
    %c0_i32_0 = arith.constant 0 : i32
    return %arg0, %c0_i32 : i32, i32
  }
}

</mosaic_0001>

<bundles_post_ra>
// kernel: mlp_forward.1
= control target key start
LH: loop header
LB: loop body
LE: loop exit
PB: predicated region body
PF: predicated region fallthrough
CT: control target
= control target key end

     0   :  { %v304_v1 = vmov 0.0   ;;  %vm305_vm0 = vmmov 0   ;;  %vm31_vm1 = vcmask 130048   ;;  %s405_s0 = inlined_call_operand.vmem [shape: f32[2,16], index: 0, kind: input, shape index: {}]   ;;  %s406_s1 = inlined_call_operand.vmem [shape: f32[16,128], index: 1, kind: input, shape index: {}]   ;;  %s407_s2 = inlined_call_operand.vmem [shape: f32[1,128], index: 2, kind: input, shape index: {}]   ;;  %s408_s3 = inlined_call_operand.vmem [shape: f32[128,8], index: 3, kind: input, shape index: {}]   ;;  %s409_s4 = inlined_call_operand.vmem [shape: f32[1,8], index: 4, kind: input, shape index: {}]   ;;  %s410_s5 = inlined_call_operand.hbm [shape: f32[2,8], index: 5, kind: output, shape index: {}]  }
   0x1   :  { %v23_v0 = vld [vmem:[%s406_s1 + $0x8] sm:$0xff]  ;;  %237 = vmatprep.subr.mxu0 %v304_v1  ;;  %v22_v2 = vld [vmem:[%s406_s1] sm:$0xff]  ;;  %241 = vmatprep.mubr.msk.f32.mxu0 %vm305_vm0, %v304_v1  ;;  %v120_v3 = vld [vmem:[%s408_s3 + $0x78] sm:$0xff] }
   0x2   :  { %238 = vmatpush3.msra.mxu0 %v23_v0  ;;  %v21_v4 = vld [vmem:[%s405_s0] sm:$0x3]  ;;  %244 = vmatprep.subr.mxu1 %v304_v1  ;;  %v119_v5 = vld [vmem:[%s408_s3 + $0x70] sm:$0xff]  ;;  %v118_v6 = vld [vmem:[%s408_s3 + $0x68] sm:$0xff] }
   0x3   :  { %239 = vmatprep.subr.mxu0 %v304_v1  ;;  %245 = vmatpush3.msra.mxu1 %v120_v3  ;;  %v117_v7 = vld [vmem:[%s408_s3 + $0x60] sm:$0xff] }
   0x4   :  { %240 = vmatpush3.msra.mxu0 %v22_v2  ;;  %246 = vmatprep.subr.mxu1 %v304_v1 }
   0x5   :  { %242 = vmatmul.mubr.msk.f32.vlgmr.msra.gmra.mxu0 %vm31_vm1, %v21_v4  ;;  %247 = vmatpush3.msra.mxu1 %v119_v5 }
   0x6   :  { %248 = vmatprep.subr.mxu1 %v304_v1  ;;  %276 = vmatprep.mubr.msk.f32.mxu1 %vm305_vm0, %v304_v1 }
   0x7   :  { %10 = vsyncpa [#allocation3], 0  ;;  %249 = vmatpush3.msra.mxu1 %v118_v6  ;;  %v116_v8 = vld [vmem:[%s408_s3 + $0x58] sm:$0xff]  ;;  %v115_v9 = vld [vmem:[%s408_s3 + $0x50] sm:$0xff]  ;;  %s306_s6 = smov [#allocation2]   ;;  %vm198_vm2 = vcmask 58368  }
   0x8   :  { %250 = vmatprep.subr.mxu1 %v304_v1  ;;  %v114_v10 = vld [vmem:[%s408_s3 + $0x48] sm:$0xff]  ;;  %v113_v11 = vld [vmem:[%s408_s3 + $0x40] sm:$0xff]  ;;  %v112_v12 = vld [vmem:[%s408_s3 + $0x38] sm:$0xff]  ;;  %s206_s7 = sshll.u32 %s306_s6, 4  ;;  %s207_s7 = int_to_ptr.vmem [resolvable:$true] %s206_s7 }
   0x9   :  { %251 = vmatpush3.msra.mxu1 %v117_v7  ;;  %v111_v13 = vld [vmem:[%s408_s3 + $0x30] sm:$0xff]  ;;  %v110_v14 = vld [vmem:[%s408_s3 + $0x28] sm:$0xff]  ;;  %v109_v15 = vld [vmem:[%s408_s3 + $0x20] sm:$0xff]  ;;  %p287_p1 = scmp.lt.s32.totalorder %s207_s7, %s207_s7 }
   0xa   :  { %252 = vmatprep.subr.mxu1 %v304_v1  ;;  %v108_v16 = vld [vmem:[%s408_s3 + $0x18] sm:$0xff]  ;;  %v107_v17 = vld [vmem:[%s408_s3 + $0x10] sm:$0xff]  ;;  %v106_v18 = vld [vmem:[%s408_s3 + $0x8] sm:$0xff] }
   0xb   :  { %253 = vmatpush3.msra.mxu1 %v116_v8  ;;  %v105_v19 = vld [vmem:[%s408_s3] sm:$0xff]  ;;  %s282_s3 = scalar_lea.vmem %s207_s7, 32 }
   0xc   :  { %254 = vmatprep.subr.mxu1 %v304_v1  ;;  %v214_v20 = vld [vmem:[%s407_s2] ss:$0 sm:$0xff]  ;;  %p283_p0 = scmp.ne.s32.totalorder %s207_s7, %s282_s3  ;;  %p288_p2 = scmp.lt.s32.totalorder %s282_s3, %s282_s3 }
   0xd   :  { %255 = vmatpush3.msra.mxu1 %v115_v9  ;;  %v216_v24 = vld [vmem:[%s409_s4] ss:$0 sm:$0xff] }
   0xe   :  { %256 = vmatprep.subr.mxu1 %v304_v1  ;;  %p289_p3 = por %p288_p2, %p287_p1 }
   0xf   :  { %257 = vmatpush3.msra.mxu1 %v114_v10 }
  0x10   :  { %258 = vmatprep.subr.mxu1 %v304_v1  ;;  %p290_p4 = pnand %p289_p3, %p283_p0 }
  0x11   :  { %259 = vmatpush3.msra.mxu1 %v113_v11 }
  0x12   :  { %260 = vmatprep.subr.mxu1 %v304_v1 }
  0x13   :  { %261 = vmatpush3.msra.mxu1 %v112_v12 }
  0x14   :  { %262 = vmatprep.subr.mxu1 %v304_v1 }
  0x15   :  { %263 = vmatpush3.msra.mxu1 %v111_v13 }
  0x16   :  { %264 = vmatprep.subr.mxu1 %v304_v1 }
  0x17   :  { %265 = vmatpush3.msra.mxu1 %v110_v14 }
  0x18   :  { %266 = vmatprep.subr.mxu1 %v304_v1 }
  0x19   :  { %267 = vmatpush3.msra.mxu1 %v109_v15 }
  0x1a   :  { %268 = vmatprep.subr.mxu1 %v304_v1 }
  0x1b   :  { %269 = vmatpush3.msra.mxu1 %v108_v16 }
  0x1c   :  { %270 = vmatprep.subr.mxu1 %v304_v1 }
  0x1d   :  { %271 = vmatpush3.msra.mxu1 %v107_v17 }
  0x1e   :  { %272 = vmatprep.subr.mxu1 %v304_v1 }
  0x1f   :  { %273 = vmatpush3.msra.mxu1 %v106_v18 }
  0x20   :  { %274 = vmatprep.subr.mxu1 %v304_v1 }
  0x21   :  { %275 = vmatpush3.msra.mxu1 %v105_v19 }
  0xc5   :  { %v101_v21 = vpop.f32.mrf.mxu0 }
  0xc6   :  { %v102_v22 = vadd.f32 %v214_v20, %v101_v21 }
  0xc7   :  { %v243_v23 = vpop.f32.mrf.mxu0 }
  0xc8   :  { %277 = vmatmul.mubr.f32.vlgmr.msra.gmra.mxu1 %v102_v22 }
 0x188   :  { %v194_v25 = vpop.f32.mrf.mxu1 }
 0x189   :  { %v195_v26 = vadd.f32 %v216_v24, %v194_v25 }
 0x18a   :  { %v278_v27 = vpop.f32.mrf.mxu1 }
 0x18b   :  { %199 = vst.msk [vmem:[#allocation2] sm:$0x3] %vm198_vm2, %v195_v26 }
 0x18c   :  { %293 = shalt.err (!%p290_p4)
}
 0x18d   :  { %209 = dma.vmem_to_hbm [thread:$0]  %s207_s7, 32, %s410_s5, [#allocation3]  }
 0x18e   :  { %302 = dma.done.wait [#allocation3], 32  }
 0x18f   :  { %303 = vsyncadd [#allocation3], 4294967264 }
 0x190   :  { %213 = vsyncpa [#allocation3], 1 }

</bundles_post_ra>
